<compile_context>
chip_gen: v7x
topology: tpu7x:2x2x1
jax: 0.10.0
libtpu: 0.0.40
codegen_flags: <defaults>
</compile_context>

<pallas_src>
import functools
import math

import numpy as np
import jax
import jax.numpy as jnp
from jax.experimental import pallas as pl
from jax.experimental.pallas import tpu as pltpu


def _mul_atten_kernel(x_ref, w_ref, o_ref, *, hidden, scale):
    # x_ref: (T, 2*Fin) = [video rows | per-row replicated sensor row] for one batch
    # w_ref: (2*Fin, 3*H) block-diagonal fused weight  -> y = [Q | V | K]
    x = x_ref[...]
    y = jnp.dot(x, w_ref[...], preferred_element_type=jnp.float32)   # (T, 3H), one MXU pass
    q = y[:, :hidden]                                                 # (T, H)
    v = y[:, hidden:2 * hidden]                                       # (T, H)
    k = y[:, 2 * hidden:]                                             # (T, H), every row == K[b]

    # scores[t] = (Q[t] . K) / sqrt(H)  -- lane reduce (XLU), no matmul with lane-width-1 output
    s = jnp.sum(q * k, axis=-1, keepdims=True) * scale                # (T, 1)

    # softmax over T (torch dim=-1 of the (B,1,T) scores): reduce over rows of this block
    m = jnp.max(s, axis=0, keepdims=True)                             # (1, 1)
    p = jnp.exp(s - m)                                                # (T, 1)
    denom = jnp.sum(p, axis=0, keepdims=True)                         # (1, 1)
    attn = p * pl.reciprocal(denom, approx=True)                      # (T, 1)

    # z = p_attn^T * V  (broadcast multiply, NOT a matmul)
    o_ref[...] = (attn * v).astype(o_ref.dtype)                       # (T, H) lane-dense store


def mul_atten(sensor_base, video_base, W_k, W_q, W_v):
    """sensor_base: (B, Fin), video_base: (B, T, Fin), W_*: (Fin, H) -> z: (B, T, H)."""
    B, T, Fin = video_base.shape
    H = W_q.shape[1]
    assert T % 8 == 0 and H % 128 == 0, "toy wrapper assumes sublane/lane aligned T, H"
    scale = 1.0 / math.sqrt(H)

    # Fused block-diagonal weight so Q, V and the replicated K come out of one matmul.
    Wcat = jnp.zeros((2 * Fin, 3 * H), jnp.float32)
    Wcat = Wcat.at[:Fin, :H].set(W_q.astype(jnp.float32))
    Wcat = Wcat.at[:Fin, H:2 * H].set(W_v.astype(jnp.float32))
    Wcat = Wcat.at[Fin:, 2 * H:].set(W_k.astype(jnp.float32))

    # Wrapper-side layout plumbing: flatten batch, replicate the sensor row across T, concat lanes.
    video_flat = video_base.reshape(B * T, Fin)
    sensor_rep = jnp.repeat(sensor_base, T, axis=0)                   # row b*T+t == sensor[b]
    x = jnp.concatenate([video_flat, sensor_rep], axis=-1)            # (B*T, 2*Fin)

    kernel = functools.partial(_mul_atten_kernel, hidden=H, scale=scale)
    z_flat = pl.pallas_call(
        kernel,
        out_shape=jax.ShapeDtypeStruct((B * T, H), jnp.float32),
        grid=(B,),
        in_specs=[
            pl.BlockSpec((T, 2 * Fin), lambda b: (b, 0)),             # one batch's rows per step
            pl.BlockSpec((2 * Fin, 3 * H), lambda b: (0, 0)),         # grid-invariant fused weight
        ],
        out_specs=pl.BlockSpec((T, H), lambda b: (b, 0)),             # (128,128) lane-dense slab
        compiler_params=pltpu.CompilerParams(dimension_semantics=("parallel",)),
    )(x, Wcat)
    return z_flat.reshape(B, T, H)


def mul_atten_reference(sensor_base, video_base, W_k, W_q, W_v):
    """Pure-JAX transliteration of the torch forward (dropout=None), for verification."""
    sK = sensor_base[:, None, :] @ W_k                                # (B, 1, H)
    vQ = video_base @ W_q                                             # (B, T, H)
    vV = video_base @ W_v                                             # (B, T, H)
    d_k = vQ.shape[-1]
    scores = (sK @ jnp.swapaxes(vQ, -1, -2)) / math.sqrt(d_k)         # (B, 1, T)
    p = jax.nn.softmax(scores, axis=-1)                               # (B, 1, T)
    return jnp.swapaxes(p, -1, -2) * vV                               # (B, T, H)


if __name__ == "__main__":
    B, T = 4, 128                    # >=2 grid steps (v7x dual-TC), T fills the MXU M dim
    in_features, hidden_dim = 32, 128  # hidden multiple of 128 -> lane-dense output

    key = jax.random.PRNGKey(0)
    ks, kv, kk, kq, kvw = jax.random.split(key, 5)

    def xavier_uniform(k, shape, gain):
        bound = gain * math.sqrt(6.0 / (shape[0] + shape[1]))
        return jax.random.uniform(k, shape, jnp.float32, -bound, bound)

    W_k = xavier_uniform(kk, (in_features, hidden_dim), 1.414)
    W_q = xavier_uniform(kq, (in_features, hidden_dim), 1.414)
    W_v = xavier_uniform(kvw, (in_features, hidden_dim), 1.414)
    sensor_base = jax.random.normal(ks, (B, in_features), dtype=jnp.float32)
    video_base = jax.random.normal(kv, (B, T, in_features), dtype=jnp.float32)

    z = mul_atten(sensor_base, video_base, W_k, W_q, W_v)
    z = jax.block_until_ready(z)

    ref = mul_atten_reference(sensor_base, video_base, W_k, W_q, W_v)
    np.testing.assert_allclose(np.asarray(z), np.asarray(ref), rtol=2e-3, atol=2e-4)

    print("KERNEL_OK")
</pallas_src>

<mosaic_0001>
module attributes {stable_mosaic.version = 11 : i64} {
  func.func @_mul_atten_kernel(%arg0: i32, %arg1: memref<128x64xf32, #tpu.memory_space<vmem>>, %arg2: memref<64x384xf32, #tpu.memory_space<vmem>>, %arg3: memref<128x128xf32, #tpu.memory_space<vmem>>) attributes {dimension_semantics = [#tpu.dimension_semantics<parallel>], iteration_bounds = array<i64: 4>, scalar_prefetch = 0 : i64, scratch_operands = 0 : i64, tpu.core_type = #tpu.core_type<tc>, window_params = [{transform_indices = @transform_0, window_bounds = array<i64: 128, 64>}, {pipeline_mode = #tpu.pipeline_mode<synchronous>, transform_indices = @transform_1, window_bounds = array<i64: 64, 384>}, {transform_indices = @transform_2, window_bounds = array<i64: 128, 128>}]} {
    %c0 = arith.constant 0 : index
    %c0_0 = arith.constant 0 : index
    %0 = vector.load %arg1[%c0, %c0_0] : memref<128x64xf32, #tpu.memory_space<vmem>>, vector<128x64xf32>
    %c0_1 = arith.constant 0 : index
    %c0_2 = arith.constant 0 : index
    %1 = vector.load %arg2[%c0_1, %c0_2] : memref<64x384xf32, #tpu.memory_space<vmem>>, vector<64x384xf32>
    %cst = arith.constant dense<0.000000e+00> : vector<128x384xf32>
    %2 = tpu.matmul %0, %1, %cst {dimension_numbers = #tpu.dot_dimension_numbers<[1], [0], [0], [1], [0, 0, 1, 1], [], []>} : vector<128x64xf32>, vector<64x384xf32>, vector<128x384xf32> -> vector<128x384xf32>
    %3 = vector.extract_strided_slice %2 {offsets = [0, 0], sizes = [128, 128], strides = [1, 1]} : vector<128x384xf32> to vector<128x128xf32>
    %4 = vector.extract_strided_slice %2 {offsets = [0, 128], sizes = [128, 128], strides = [1, 1]} : vector<128x384xf32> to vector<128x128xf32>
    %5 = vector.extract_strided_slice %2 {offsets = [0, 256], sizes = [128, 128], strides = [1, 1]} : vector<128x384xf32> to vector<128x128xf32>
    %6 = arith.mulf %3, %5 : vector<128x128xf32>
    %cst_3 = arith.constant dense<0.000000e+00> : vector<128xf32>
    %7 = vector.multi_reduction <add>, %6, %cst_3 [1] : vector<128x128xf32> to vector<128xf32>
    %8 = vector.shape_cast %7 : vector<128xf32> to vector<128x1xf32>
    %cst_4 = arith.constant 0.0883883461 : f32
    %9 = vector.broadcast %cst_4 : f32 to vector<128x1xf32>
    %10 = arith.mulf %8, %9 : vector<128x1xf32>
    %cst_5 = arith.constant dense<0xFF800000> : vector<1xf32>
    %11 = vector.multi_reduction <maximumf>, %10, %cst_5 [0] : vector<128x1xf32> to vector<1xf32>
    %12 = vector.shape_cast %11 : vector<1xf32> to vector<1x1xf32>
    %13 = vector.broadcast %12 : vector<1x1xf32> to vector<128x1xf32>
    %14 = arith.subf %10, %13 : vector<128x1xf32>
    %15 = math.exp %14 : vector<128x1xf32>
    %cst_6 = arith.constant dense<0.000000e+00> : vector<1xf32>
    %16 = vector.multi_reduction <add>, %15, %cst_6 [0] : vector<128x1xf32> to vector<1xf32>
    %17 = vector.shape_cast %16 : vector<1xf32> to vector<1x1xf32>
    %18 = tpu.reciprocal %17 {approx = true} : vector<1x1xf32> -> vector<1x1xf32>
    %19 = vector.broadcast %18 : vector<1x1xf32> to vector<128x1xf32>
    %20 = arith.mulf %15, %19 : vector<128x1xf32>
    %21 = vector.broadcast %20 : vector<128x1xf32> to vector<128x128xf32>
    %22 = arith.mulf %21, %4 : vector<128x128xf32>
    %c0_7 = arith.constant 0 : index
    %c0_8 = arith.constant 0 : index
    %23 = vector.load %arg3[%c0_7, %c0_8] : memref<128x128xf32, #tpu.memory_space<vmem>>, vector<128x128xf32>
    tpu.vector_store %arg3[%c0_7, %c0_8], %22 {strides = array<i32>} : memref<128x128xf32, #tpu.memory_space<vmem>>, vector<128x128xf32>,
    return
  }
  func.func @transform_0(%arg0: i32) -> (i32, i32) {
    %c0_i32 = arith.constant 0 : i32
    %c0_i32_0 = arith.constant 0 : i32
    return %arg0, %c0_i32 : i32, i32
  }
  func.func @transform_1(%arg0: i32) -> (i32, i32) {
    %c0_i32 = arith.constant 0 : i32
    %c0_i32_0 = arith.constant 0 : i32
    %c0_i32_1 = arith.constant 0 : i32
    return %c0_i32, %c0_i32_0 : i32, i32
  }
  func.func @transform_2(%arg0: i32) -> (i32, i32) {
    %c0_i32 = arith.constant 0 : i32
    %c0_i32_0 = arith.constant 0 : i32
    return %arg0, %c0_i32 : i32, i32
  }
}

</mosaic_0001>

<bundles_post_ra>
// kernel: tpu_custom_call.1
= control target key start
LH: loop header
LB: loop body
LE: loop exit
PB: predicated region body
PF: predicated region fallthrough
CT: control target
= control target key end

     0   :  { %7 = vsyncpa [#allocation3], 0  ;;  %s1494_s0 = inlined_call_operand.vmem [shape: f32[512,64], index: 0, kind: input, shape index: {}]   ;;  %s1495_s1 = inlined_call_operand.vmem [shape: f32[64,384], index: 1, kind: input, shape index: {}]   ;;  %s1496_s2 = inlined_call_operand.hbm [shape: f32[512,128], index: 2, kind: output, shape index: {}]  }
   0x1   :  { %9 = vsyncpa [#allocation3 + $0x1], 0  ;;  %s1127_s9 = smov 0   ;;  %s1129_s10 = smov 0  }
   0x2   :  { %s1131_s11 = smov 0   ;;  %s1133_s12 = smov 0  }
   0x3 LB: > { %s1148_s13 = sadd.s32 4294967295, %s1106_s12   ;;  %s819_s14 = sadd.s32 4294967294, %s1106_s12   ;;  %s1106_s12 = sphi %s1133_s12, %s1503_s12   ;;  %s1102_s11 = sphi %s1131_s11, %s1502_s11   ;;  %s1098_s10 = sphi %s1129_s10, %s1501_s10   ;;  %s1094_s9 = sphi %s1127_s9, %s1500_s9  }
   0x4   : > { %s1152_s15 = sadd.s32 1, %s1106_s12   ;;  %s69_s16 = sadd.s32 1, %s1102_s11 }
   0x5   : > { %s66_s17 = ssub.s32 %s1106_s12, %s1152_s15  ;;  %p79_p0 = scmp.ne.s32.totalorder %s1102_s11, %s1098_s10 }
   0x6   : > { %p67_p1 = scmp.eq.s32.totalorder %s66_s17, 0  ;;  %p80_p2 = scmp.eq.s32.totalorder %s1148_s13, 3 }
   0x7   : > { %p85_p3 = scmp.ne.s32.totalorder %s1098_s10, %s1094_s9  ;;  %p86_p4 = scmp.eq.s32.totalorder %s819_s14, 3 }
   0x8   : > { %s1163_s18 = scalar_select %p67_p1, %s1102_s11, %s69_s16  }
   0x9   : > { %p1165_p5 = por %p80_p2, %p79_p0  ;;  %p1169_p6 = por %p86_p4, %p85_p3 }
   0xa   : > { %p822_p7 = scmp.ge.s32.totalorder %s1106_s12, 1  ;;  %p116_p8 = scmp.lt.s32.totalorder %s1106_s12, 5 }
   0xc   : > { %p117_p9 = pnand %p822_p7, %p116_p8 }
   0xd   : > { %v162_v0 = vld [vmem:[%s1495_s1 + $0x8] sm:$0xff] (!%p117_p9)  ;;  %v165_v1 = vld [vmem:[%s1495_s1 + $0x20] sm:$0xff] (!%p117_p9)  ;;  %s824_s27 = sshll.u32 (!%p117_p9), %s1148_s13, 4  ;;  %v164_v4 = vld [vmem:[%s1495_s1 + $0x18] sm:$0xff] (!%p117_p9)  ;;  %v1108_v7 = vmov (!%p117_p9), 0.0   ;;  %vm185_vm0 = vcmask (!%p117_p9), 523264  }
   0xe   : > { %120 = sbr.rel (%p117_p9) target bundleno = 554 (0x22a), region = 28  ;;  %v161_v2 = vld [vmem:[%s1495_s1] sm:$0xff] (!%p117_p9)  ;;  %v928_v3 = vpack.c.bf16 (!%p117_p9), %v165_v1, %v162_v0  ;;  %v168_v5 = vld [vmem:[%s1495_s1 + $0x38] sm:$0xff] (!%p117_p9)  ;;  %v171_v6 = vld [vmem:[%s1495_s1 + $0x50] sm:$0xff] (!%p117_p9)  ;;  %298 = vmatprep.mubr.f32.mxu0 (!%p117_p9), %v1108_v7  ;;  %370 = vmatprep.mubr.f32.mxu1 (!%p117_p9), %v1108_v7  ;;  %p1205_p10 = scmp.lt.s32.totalorder (!%p117_p9), %s824_s27, 63 }
   0xf   : > { %v930_v8 = vpack.c.bf16 (!%p117_p9), %v164_v4, %v161_v2  ;;  %v932_v9 = vpack.c.bf16 (!%p117_p9), %v171_v6, %v168_v5  ;;  %v167_v10 = vld [vmem:[%s1495_s1 + $0x30] sm:$0xff] (!%p117_p9)  ;;  %v170_v11 = vld [vmem:[%s1495_s1 + $0x48] sm:$0xff] (!%p117_p9)  ;;  %v177_v13 = vld [vmem:[%s1495_s1 + $0x80] sm:$0xff] (!%p117_p9)  ;;  %s135_s16 = sand.u32 (!%p117_p9), 1, %s1098_s10   ;;  %s863_s21 = sshll.u32 (!%p117_p9), %s1148_s13, 11 }
  0x10   : > { %v174_v12 = vld [vmem:[%s1495_s1 + $0x68] sm:$0xff] (!%p117_p9)  ;;  %929 = vmatprep.subr.bf16.mxu0 (!%p117_p9), %v928_v3  ;;  %960 = vmatprep.subr.bf16.mxu1 (!%p117_p9), %v928_v3  ;;  %v934_v14 = vpack.c.bf16 (!%p117_p9), %v170_v11, %v167_v10  ;;  %v173_v16 = vld [vmem:[%s1495_s1 + $0x60] sm:$0xff] (!%p117_p9)  ;;  %v176_v17 = vld [vmem:[%s1495_s1 + $0x78] sm:$0xff] (!%p117_p9)  ;;  %s823_s17 = sshll.u32 (!%p117_p9), %s135_s16, 7  ;;  %s1109_s28 = smov (!%p117_p9), [#allocation2]  }
  0x11   : > { %931 = vmatpush1.bf16.msra.mxu0 (!%p117_p9), %v930_v8  ;;  %964 = vmatpush1.bf16.msra.mxu1 (!%p117_p9), %v930_v8  ;;  %v936_v15 = vpack.c.bf16 (!%p117_p9), %v177_v13, %v174_v12  ;;  %v180_v18 = vld [vmem:[%s1495_s1 + $0x98] sm:$0xff] (!%p117_p9)  ;;  %v183_v19 = vld [vmem:[%s1495_s1 + $0xb0] sm:$0xff] (!%p117_p9)  ;;  %v938_v20 = vpack.c.bf16 (!%p117_p9), %v176_v17, %v173_v16  ;;  %v182_v23 = vld [vmem:[%s1495_s1 + $0xa8] sm:$0xff] (!%p117_p9)  ;;  %s1409_s22 = scalar_lea.vmem (!%p117_p9), [#allocation2], %s823_s17  ;;  %s1048_s29 = sshll.u32 (!%p117_p9), %s1109_s28, 4  ;;  %s1049_s29 = int_to_ptr.vmem [resolvable:$false] %s1048_s29 }
  0x12   : > { %933 = vmatprep.subr.bf16.mxu0 (!%p117_p9), %v932_v9  ;;  %961 = vmatprep.subr.bf16.mxu1 (!%p117_p9), %v932_v9  ;;  %v940_v21 = vpack.c.bf16 (!%p117_p9), %v183_v19, %v180_v18  ;;  %v179_v22 = vld [vmem:[%s1495_s1 + $0x90] sm:$0xff] (!%p117_p9)  ;;  %v166_v25 = vld [vmem:[%s1495_s1 + $0x28] sm:$0xff] (!%p117_p9)  ;;  %v169_v28 = vld [vmem:[%s1495_s1 + $0x40] sm:$0xff] (!%p117_p9)  ;;  %s757_s23 = sshll.u32 (!%p117_p9), %s1409_s22, 4  ;;  %s1050_s30 = scalar_lea.vmem (!%p117_p9), %s1049_s29, 4096  ;;  %s1433_s23 = int_to_ptr.vmem [resolvable:$true] %s757_s23 }
  0x13   : > { %v163_v24 = vld [vmem:[%s1495_s1 + $0x10] sm:$0xff] (!%p117_p9)  ;;  %v942_v26 = vpack.c.bf16 (!%p117_p9), %v182_v23, %v179_v22  ;;  %v172_v29 = vld [vmem:[%s1495_s1 + $0x58] sm:$0xff] (!%p117_p9)  ;;  %v178_v34 = vld [vmem:[%s1495_s1 + $0x88] sm:$0xff] (!%p117_p9)  ;;  %s1044_s26 = scalar_lea.vmem (!%p117_p9), %s1433_s23, 2048  ;;  %p1051_p0 = scmp.lt.s32.totalorder (!%p117_p9), %s1433_s23, %s1049_s29 }
  0x14   : > { %v944_v27 = vpack.c.bf16 (!%p117_p9), %v166_v25, %v163_v24  ;;  %v948_v32 = vpack.c.bf16 (!%p117_p9), %v172_v29, %v169_v28  ;;  %v175_v33 = vld [vmem:[%s1495_s1 + $0x70] sm:$0xff] (!%p117_p9)  ;;  %v181_v38 = vld [vmem:[%s1495_s1 + $0xa0] sm:$0xff] (!%p117_p9)  ;;  %v184_v39 = vld [vmem:[%s1495_s1 + $0xb8] sm:$0xff] (!%p117_p9)  ;;  %p1045_p11 = scmp.ne.s32.totalorder (!%p117_p9), %s1433_s23, %s1044_s26  ;;  %p1052_p1 = scmp.lt.s32.totalorder (!%p117_p9), %s1050_s30, %s1044_s26 }
  0x15   : > { %s1505_s27 = smov (!%p1205_p10, %s824_s27), 63  ;;  %935 = vmatpush1.bf16.msra.mxu0 %v934_v14  ;;  %965 = vmatpush1.bf16.msra.mxu1 %v934_v14  ;;  %v952_v37 = vpack.c.bf16 %v178_v34, %v175_v33  ;;  %v956_v42 = vpack.c.bf16 %v184_v39, %v181_v38 }
  0x16   : > { %937 = vmatprep.subr.bf16.mxu0 %v936_v15  ;;  %962 = vmatprep.subr.bf16.mxu1 %v936_v15  ;;  %s825_s14 = sshll.u32 %s1505_s27, 3  ;;  %s1453_s27 = scalar_lea.sflag [#allocation3], %s135_s16 }
  0x17   : > { %s1241_s25 = scalar_lea.vmem %s1494_s0, %s825_s14  ;;  %p1046_p12 = pnand %p1045_p11, %p1165_p5 }
  0x18   : > { %v145_v30 = vld [vmem:[%s1241_s25] sm:$0xff]  ;;  %v146_v35 = vld [vmem:[%s1241_s25 + $0x8] sm:$0xff]  ;;  %v147_v40 = vld [vmem:[%s1241_s25 + $0x10] sm:$0xff]  ;;  %p1053_p2 = por %p1052_p1, %p1051_p0 }
  0x19   : > { %939 = vmatpush1.bf16.msra.mxu0 %v938_v20  ;;  %966 = vmatpush1.bf16.msra.mxu1 %v938_v20  ;;  %v1251_v31 = vld [vmem:[%s1241_s25 + $0x60] sm:$0xff]  ;;  %v158_v36 = vld [vmem:[%s1241_s25 + $0x68] sm:$0xff]  ;;  %v159_v41 = vld [vmem:[%s1241_s25 + $0x70] sm:$0xff]  ;;  %p1047_p13 = pneg %p1046_p12 }
  0x1a   : > { %941 = vmatprep.subr.bf16.mxu0 %v940_v21  ;;  %963 = vmatprep.subr.bf16.mxu1 %v940_v21  ;;  %v148_v43 = vld [vmem:[%s1241_s25 + $0x18] sm:$0xff]  ;;  %v149_v45 = vld [vmem:[%s1241_s25 + $0x20] sm:$0xff]  ;;  %v150_v46 = vld [vmem:[%s1241_s25 + $0x28] sm:$0xff] }
  0x1b   : > { %v160_v44 = vld [vmem:[%s1241_s25 + $0x78] sm:$0xff]  ;;  %v151_v47 = vld [vmem:[%s1241_s25 + $0x30] sm:$0xff]  ;;  %v153_v49 = vld [vmem:[%s1241_s25 + $0x40] sm:$0xff]  ;;  %p1054_p3 = pnand %p1053_p2, %p1047_p13 }
  0x1c   : > { %v152_v48 = vld [vmem:[%s1241_s25 + $0x38] sm:$0xff]  ;;  %v154_v50 = vld [vmem:[%s1241_s25 + $0x48] sm:$0xff]  ;;  %v155_v51 = vld [vmem:[%s1241_s25 + $0x50] sm:$0xff] }
  0x1d   : > { %943 = vmatpush1.bf16.msra.mxu0 %v942_v26  ;;  %967 = vmatpush1.bf16.msra.mxu1 %v942_v26  ;;  %v156_v52 = vld [vmem:[%s1241_s25 + $0x58] sm:$0xff]  ;;  %s1431_s25 = scalar_lea.hbm %s1496_s2, %s863_s21 }
  0x1e   : > { %945 = vmatprep.subr.bf16.mxu1 %v944_v27 }
  0x20   : > { %826 = vmatmul.mubr.msk.f32.vlgmr.msra.gmra.mrb[0].mxu0 %vm185_vm0, %v145_v30  ;;  %838 = vmatmul.mubr.msk.f32.vlgmr.msra.gmra.mrb[0].mxu1 %vm185_vm0, %v1251_v31 }
  0x21   : > { %947 = vmatpush3.bf16.msra.mxu1 %v944_v27  ;;  %304 = vmatprep.mubr.f32.mxu0 %v1108_v7 }
  0x22   : > { %376 = vmatprep.mubr.f32.mxu1 %v1108_v7  ;;  %949 = vmatprep.subr.bf16.mxu1 %v948_v32 }
  0x24   : > { %827 = vmatmul.mubr.msk.f32.gmra.mrb[2].mxu0 %vm185_vm0, %v146_v35  ;;  %839 = vmatmul.mubr.msk.f32.gmra.mrb[2].mxu1 %vm185_vm0, %v158_v36 }
  0x25   : > { %951 = vmatpush3.bf16.msra.mxu1 %v948_v32  ;;  %310 = vmatprep.mubr.f32.mxu0 %v1108_v7 }
  0x26   : > { %382 = vmatprep.mubr.f32.mxu1 %v1108_v7  ;;  %953 = vmatprep.subr.bf16.mxu1 %v952_v37 }
  0x28   : > { %828 = vmatmul.mubr.msk.f32.gmra.mrb[4].mxu0 %vm185_vm0, %v147_v40  ;;  %840 = vmatmul.mubr.msk.f32.gmra.mrb[4].mxu1 %vm185_vm0, %v159_v41 }
  0x29   : > { %955 = vmatpush3.bf16.msra.mxu1 %v952_v37  ;;  %316 = vmatprep.mubr.f32.mxu0 %v1108_v7 }
  0x2a   : > { %388 = vmatprep.mubr.f32.mxu1 %v1108_v7  ;;  %957 = vmatprep.subr.bf16.mxu1 %v956_v42 }
  0x2c   : > { %829 = vmatmul.mubr.msk.f32.gmra.mrb[6].mxu0 %vm185_vm0, %v148_v43  ;;  %841 = vmatmul.mubr.msk.f32.gmra.mrb[6].mxu1 %vm185_vm0, %v160_v44 }
  0x2d   : > { %959 = vmatpush3.bf16.msra.mxu1 %v956_v42  ;;  %322 = vmatprep.mubr.f32.mxu0 %v1108_v7 }
  0x2e   : > { %904 = vmatprep.mubr.msk.f32.mxu1 %vm185_vm0, %v145_v30 }
  0x30   : > { %830 = vmatmul.mubr.msk.f32.gmra.mrb[8].mxu0 %vm185_vm0, %v149_v45  ;;  %905 = vmatmul.mubr.msk.f32.vlgmr.msra.gmra.mrb[8].mxu1 %vm185_vm0, %v146_v35 }
  0x31   : > { %328 = vmatprep.mubr.f32.mxu0 %v1108_v7  ;;  %907 = vmatprep.mubr.msk.f32.mxu1 %vm185_vm0, %v147_v40 }
  0x34   : > { %831 = vmatmul.mubr.msk.f32.gmra.mrb[10].mxu0 %vm185_vm0, %v150_v46  ;;  %908 = vmatmul.mubr.msk.f32.gmra.mrb[10].mxu1 %vm185_vm0, %v148_v43 }
  0x35   : > { %334 = vmatprep.mubr.f32.mxu0 %v1108_v7  ;;  %910 = vmatprep.mubr.msk.f32.mxu1 %vm185_vm0, %v149_v45 }
  0x38   : > { %832 = vmatmul.mubr.msk.f32.gmra.mrb[12].mxu0 %vm185_vm0, %v151_v47  ;;  %911 = vmatmul.mubr.msk.f32.gmra.mrb[12].mxu1 %vm185_vm0, %v150_v46 }
  0x39   : > { %340 = vmatprep.mubr.f32.mxu0 %v1108_v7  ;;  %913 = vmatprep.mubr.msk.f32.mxu1 %vm185_vm0, %v151_v47 }
  0x3c   : > { %833 = vmatmul.mubr.msk.f32.gmra.mrb[14].mxu0 %vm185_vm0, %v152_v48  ;;  %914 = vmatmul.mubr.msk.f32.gmra.mrb[14].mxu1 %vm185_vm0, %v152_v48 }
  0x3d   : > { %346 = vmatprep.mubr.f32.mxu0 %v1108_v7  ;;  %916 = vmatprep.mubr.msk.f32.mxu1 %vm185_vm0, %v153_v49 }
  0x40   : > { %834 = vmatmul.mubr.msk.f32.gmra.mrb[16].mxu0 %vm185_vm0, %v153_v49  ;;  %917 = vmatmul.mubr.msk.f32.gmra.mrb[16].mxu1 %vm185_vm0, %v154_v50 }
  0x41   : > { %352 = vmatprep.mubr.f32.mxu0 %v1108_v7  ;;  %919 = vmatprep.mubr.msk.f32.mxu1 %vm185_vm0, %v155_v51 }
  0x44   : > { %835 = vmatmul.mubr.msk.f32.gmra.mrb[18].mxu0 %vm185_vm0, %v154_v50  ;;  %920 = vmatmul.mubr.msk.f32.gmra.mrb[18].mxu1 %vm185_vm0, %v156_v52 }
  0x45   : > { %358 = vmatprep.mubr.f32.mxu0 %v1108_v7  ;;  %922 = vmatprep.mubr.msk.f32.mxu1 %vm185_vm0, %v1251_v31 }
  0x48   : > { %836 = vmatmul.mubr.msk.f32.gmra.mrb[20].mxu0 %vm185_vm0, %v155_v51  ;;  %923 = vmatmul.mubr.msk.f32.gmra.mrb[20].mxu1 %vm185_vm0, %v158_v36 }
  0x49   : > { %364 = vmatprep.mubr.f32.mxu0 %v1108_v7  ;;  %925 = vmatprep.mubr.msk.f32.mxu1 %vm185_vm0, %v159_v41 }
  0x4c   : > { %837 = vmatmul.mubr.msk.f32.gmra.mrb[22].mxu0 %vm185_vm0, %v156_v52  ;;  %926 = vmatmul.mubr.msk.f32.gmra.mrb[22].mxu1 %vm185_vm0, %v160_v44 }
  0xf3   : > { %v300_v53 = vpop.f32.mrb[0].mxu0  ;;  %v1327_v54 = vpop.f32.mrb[0].mxu1 }
  0xf4   : > { %v1329_v55 = vpop.f32.mrb[1].mxu0  ;;  %v1331_v56 = vpop.f32.mrb[1].mxu1 }
  0xf7   : > { %v306_v57 = vpop.f32.mrb[2].mxu0  ;;  %v378_v58 = vpop.f32.mrb[2].mxu1 }
  0xf8   : > { %v1333_v59 = vpop.f32.mrb[3].mxu0  ;;  %v1335_v60 = vpop.f32.mrb[3].mxu1 }
  0xfb   : > { %v312_v61 = vpop.f32.mrb[4].mxu0  ;;  %v1337_v62 = vpop.f32.mrb[4].mxu1 }
  0xfc   : > { %v1339_v63 = vpop.f32.mrb[5].mxu0  ;;  %v1341_v0 = vpop.f32.mrb[5].mxu1 }
  0xff   : > { %v318_v1 = vpop.f32.mrb[6].mxu0  ;;  %v390_v2 = vpop.f32.mrb[6].mxu1 }
 0x100   : > { %v1343_v3 = vpop.f32.mrb[7].mxu0  ;;  %v1345_v4 = vpop.f32.mrb[7].mxu1 }
 0x103   : > { %v324_v5 = vpop.f32.mrb[8].mxu0  ;;  %v906_v6 = vpop.f32.mrb[8].mxu1 }
 0x104   : > { %v1347_v7 = vpop.f32.mrb[9].mxu0  ;;  %v461_v8 = vpop.f32.mrb[9].mxu1  ;;  %v541_v9 = vmul.f32 %v906_v6, %v306_v57 }
 0x105   : > { %v540_v10 = vmul.f32 %v461_v8, %v300_v53 }
 0x106   : > { %558 = vadd.xlane.f32.xlu0 %v541_v9 }
 0x107   : > { %v330_v11 = vpop.f32.mrb[10].mxu0  ;;  %v909_v12 = vpop.f32.mrb[10].mxu1 }
 0x108   : > { %v1349_v13 = vpop.f32.mrb[11].mxu0  ;;  %v471_v14 = vpop.f32.mrb[11].mxu1  ;;  %v543_v15 = vmul.f32 %v909_v12, %v318_v1 }
 0x109   : > { %v542_v16 = vmul.f32 %v471_v14, %v312_v61 }
 0x10a   : > { %556 = vadd.xlane.f32.xlu0 %v540_v10  ;;  %562 = vadd.xlane.f32.xlu1 %v543_v15 }
 0x10b   : > { %v336_v17 = vpop.f32.mrb[12].mxu0  ;;  %v912_v18 = vpop.f32.mrb[12].mxu1 }
 0x10c   : > { %v545_v19 = vmul.f32 %v912_v18, %v330_v11  ;;  %v1351_v20 = vpop.f32.mrb[13].mxu0  ;;  %v481_v21 = vpop.f32.mrb[13].mxu1 }
 0x10d   : > { %v544_v22 = vmul.f32 %v481_v21, %v324_v5 }
 0x10e   : > { %560 = vadd.xlane.f32.xlu1 %v542_v16 }
 0x10f   : > { %v915_v23 = vpop.f32.mrb[14].mxu1  ;;  %564 = vadd.xlane.f32.xlu0 %v544_v22  ;;  %v342_v24 = vpop.f32.mrb[14].mxu0 }
 0x110   : > { %v547_v25 = vmul.f32 %v915_v23, %v342_v24  ;;  %v1353_v26 = vpop.f32.mrb[15].mxu0  ;;  %v491_v27 = vpop.f32.mrb[15].mxu1 }
 0x111   : > { %v546_v28 = vmul.f32 %v491_v27, %v336_v17 }
 0x112   : > { %566 = vadd.xlane.f32.xlu1 %v545_v19 }
 0x113   : > { %v918_v29 = vpop.f32.mrb[16].mxu1  ;;  %568 = vadd.xlane.f32.xlu0 %v546_v28  ;;  %v348_v30 = vpop.f32.mrb[16].mxu0 }
 0x114   : > { %v1355_v31 = vpop.f32.mrb[17].mxu0  ;;  %v501_v32 = vpop.f32.mrb[17].mxu1 }
 0x115   : > { %v548_v33 = vmul.f32 %v501_v32, %v348_v30 }
 0x116   : > { %570 = vadd.xlane.f32.xlu1 %v547_v25 }
 0x117   : > { %v921_v34 = vpop.f32.mrb[18].mxu1  ;;  %572 = vadd.xlane.f32.xlu0 %v548_v33  ;;  %v354_v35 = vpop.f32.mrb[18].mxu0 }
 0x118   : > { %v549_v36 = vmul.f32 %v918_v29, %v354_v35  ;;  %v1357_v37 = vpop.f32.mrb[19].mxu0  ;;  %v511_v38 = vpop.f32.mrb[19].mxu1 }
 0x11a   : > { %574 = vadd.xlane.f32.xlu1 %v549_v36 }
 0x11b   : > { %v360_v39 = vpop.f32.mrb[20].mxu0  ;;  %v924_v40 = vpop.f32.mrb[20].mxu1 }
 0x11c   : > { %v550_v41 = vmul.f32 %v511_v38, %v360_v39  ;;  %v553_v42 = vmul.f32 %v924_v40, %v378_v58  ;;  %v1359_v43 = vpop.f32.mrb[21].mxu0  ;;  %v521_v44 = vpop.f32.mrb[21].mxu1 }
 0x11d   : > { %v552_v45 = vmul.f32 %v521_v44, %v1327_v54 }
 0x11e   : > { %582 = vadd.xlane.f32.xlu1 %v553_v42  ;;  %576 = vadd.xlane.f32.xlu0 %v550_v41 }
 0x11f   : > { %v366_v46 = vpop.f32.mrb[22].mxu0  ;;  %v927_v47 = vpop.f32.mrb[22].mxu1 }
 0x120   : > { %v551_v48 = vmul.f32 %v921_v34, %v366_v46  ;;  %v555_v49 = vmul.f32 %v927_v47, %v390_v2  ;;  %v1362_v50 = vpop.f32.mrb[23].mxu0  ;;  %v531_v51 = vpop.f32.mrb[23].mxu1 }
 0x121   : > { %v554_v52 = vmul.f32 %v531_v51, %v1337_v62 }
 0x122   : > { %580 = vadd.xlane.f32.xlu0 %v552_v45  ;;  %578 = vadd.xlane.f32.xlu1 %v551_v48 }
 0x126   : > { %584 = vadd.xlane.f32.xlu0 %v554_v52  ;;  %586 = vadd.xlane.f32.xlu1 %v555_v49 }
 0x193   : > { %v559_v53 = vpop.xlane.xlu0 %558 }
 0x194   : > { %v589_v12 = vmul.f32 0.088388346, %v559_v53 }
 0x197   : > { %v557_v57 = vpop.xlane.xlu0 %556  ;;  %v563_v58 = vpop.xlane.xlu1 %562 }
 0x198   : > { %v588_v15 = vmul.f32 0.088388346, %v557_v57  ;;  %v591_v24 = vmul.f32 0.088388346, %v563_v58 }
 0x19b   : > { %v561_v61 = vpop.xlane.xlu1 %560 }
 0x19c   : > { %v565_v54 = vpop.xlane.xlu0 %564  ;;  %v590_v18 = vmul.f32 0.088388346, %v561_v61 }
 0x19d   : > { %v592_v11 = vmul.f32 0.088388346, %v565_v54 }
 0x19f   : > { %v567_v1 = vpop.xlane.xlu1 %566  ;;  %v604_v25 = vmax.f32 %v588_v15, %v592_v11 }
 0x1a0   : > { %v569_v5 = vpop.xlane.xlu0 %568  ;;  %v593_v14 = vmul.f32 0.088388346, %v567_v1 }
 0x1a1   : > { %v594_v62 = vmul.f32 0.088388346, %v569_v5 }
 0x1a2   : > { %v605_v29 = vmax.f32 %v589_v12, %v593_v14 }
 0x1a3   : > { %v571_v6 = vpop.xlane.xlu1 %570  ;;  %v606_v30 = vmax.f32 %v590_v18, %v594_v62 }
 0x1a4   : > { %v573_v8 = vpop.xlane.xlu0 %572  ;;  %v595_v16 = vmul.f32 0.088388346, %v571_v6 }
 0x1a5   : > { %v1365_v17 = vmul.f32 0.088388346, %v573_v8 }
 0x1a6   : > { %v607_v32 = vmax.f32 %v591_v24, %v595_v16 }
 0x1a7   : > { %v575_v9 = vpop.xlane.xlu1 %574  ;;  %v608_v33 = vmax.f32 %v604_v25, %v1365_v17 }
 0x1a8   : > { %v1367_v19 = vmul.f32 0.088388346, %v575_v9 }
 0x1aa   : > { %v609_v35 = vmax.f32 %v605_v29, %v1367_v19 }
 0x1ab   : > { %v583_v2 = vpop.xlane.xlu1 %582  ;;  %v577_v10 = vpop.xlane.xlu0 %576 }
 0x1ac   : > { %v1369_v21 = vmul.f32 0.088388346, %v577_v10  ;;  %v1376_v34 = vmul.f32 0.088388346, %v583_v2 }
 0x1ae   : > { %v610_v36 = vmax.f32 %v606_v30, %v1369_v21  ;;  %v613_v45 = vmax.f32 %v609_v35, %v1376_v34 }
 0x1af   : > { %v581_v22 = vpop.xlane.xlu0 %580  ;;  %v579_v23 = vpop.xlane.xlu1 %578 }
 0x1b0   : > { %v1371_v27 = vmul.f32 0.088388346, %v581_v22  ;;  %v1373_v28 = vmul.f32 0.088388346, %v579_v23 }
 0x1b2   : > { %v612_v40 = vmax.f32 %v608_v33, %v1371_v27  ;;  %v611_v41 = vmax.f32 %v607_v32, %v1373_v28 }
 0x1b3   : > { %v585_v38 = vpop.xlane.xlu0 %584  ;;  %v587_v39 = vpop.xlane.xlu1 %586 }
 0x1b4   : > { %v1382_v42 = vmul.f32 0.088388346, %v585_v38  ;;  %v1384_v44 = vmul.f32 0.088388346, %v587_v39  ;;  %v616_v48 = vmax.f32 %v612_v40, %v613_v45 }
 0x1b6   : > { %v614_v46 = vmax.f32 %v610_v36, %v1382_v42  ;;  %v615_v47 = vmax.f32 %v611_v41, %v1384_v44 }
 0x1b8   : > { %v617_v49 = vmax.f32 %v614_v46, %v615_v47 }
 0x1ba   : > { %v618_v51 = vmax.f32 %v616_v48, %v617_v49 }
 0x1bc   : > { %v619_v52 = vrot.slane %v618_v51, 4 }
 0x1be   : > { %v620_v53 = vmax.f32 %v618_v51, %v619_v52 }
 0x1c0   : > { %v621_v57 = vrot.slane %v620_v53, 2 }
 0x1c2   : > { %v622_v58 = vmax.f32 %v620_v53, %v621_v57 }
 0x1c4   : > { %v623_v61 = vrot.slane %v622_v58, 1 }
 0x1c6   : > { %v624_v54 = vmax.f32 %v622_v58, %v623_v61 }
 0x1c8   : > { %v625_v1 = vsub.f32 %v588_v15, %v624_v54  ;;  %v626_v5 = vsub.f32 %v589_v12, %v624_v54  ;;  %v627_v6 = vsub.f32 %v590_v18, %v624_v54  ;;  %v628_v8 = vsub.f32 %v591_v24, %v624_v54 }
 0x1c9   : > { %v629_v10 = vsub.f32 %v592_v11, %v624_v54  ;;  %v630_v23 = vsub.f32 %v593_v14, %v624_v54  ;;  %v631_v29 = vsub.f32 %v594_v62, %v624_v54  ;;  %v632_v32 = vsub.f32 %v595_v16, %v624_v54 }
 0x1ca   : > { %v641_v9 = vmul.f32 1.442695, %v625_v1  ;;  %v643_v2 = vmul.f32 1.442695, %v626_v5  ;;  %v645_v22 = vmul.f32 1.442695, %v627_v6  ;;  %v633_v35 = vsub.f32 %v1365_v17, %v624_v54 }
 0x1cb   : > { %v647_v25 = vmul.f32 1.442695, %v628_v8  ;;  %v649_v30 = vmul.f32 1.442695, %v629_v10  ;;  %v651_v33 = vmul.f32 1.442695, %v630_v23  ;;  %v634_v15 = vsub.f32 %v1367_v19, %v624_v54 }
 0x1cc   : > { %1010 = vpow2.f32 %v641_v9  ;;  %v653_v12 = vmul.f32 1.442695, %v631_v29  ;;  %v655_v18 = vmul.f32 1.442695, %v632_v32  ;;  %v635_v14 = vsub.f32 %v1369_v21, %v624_v54 }
 0x1cd   : > { %1012 = vpow2.f32 %v643_v2  ;;  %v657_v62 = vmul.f32 1.442695, %v633_v35  ;;  %v636_v17 = vsub.f32 %v1373_v28, %v624_v54  ;;  %v659_v38 = vmul.f32 1.442695, %v634_v15 }
 0x1ce   : > { %1014 = vpow2.f32 %v645_v22  ;;  %v637_v40 = vsub.f32 %v1371_v27, %v624_v54  ;;  %v661_v41 = vmul.f32 1.442695, %v635_v14  ;;  %v638_v21 = vsub.f32 %v1376_v34, %v624_v54 }
 0x1cf   : > { %1016 = vpow2.f32 %v647_v25  ;;  %v663_v47 = vmul.f32 1.442695, %v636_v17  ;;  %v639_v51 = vsub.f32 %v1382_v42, %v624_v54  ;;  %v640_v57 = vsub.f32 %v1384_v44, %v624_v54 }
 0x1d0   : > { %1018 = vpow2.f32 %v649_v30  ;;  %v665_v28 = vmul.f32 1.442695, %v637_v40  ;;  %v667_v27 = vmul.f32 1.442695, %v638_v21 }
 0x1d1   : > { %1020 = vpow2.f32 %v651_v33  ;;  %v669_v1 = vmul.f32 1.442695, %v639_v51  ;;  %v671_v6 = vmul.f32 1.442695, %v640_v57 }
 0x1d2   : > { %1022 = vpow2.f32 %v653_v12 }
 0x1d3   : > { %1024 = vpow2.f32 %v655_v18 }
 0x1d4   : > { %1026 = vpow2.f32 %v657_v62 }
 0x1d5   : > { %1028 = vpow2.f32 %v659_v38 }
 0x1d6   : > { %v1391_v11 = vpop.eup %1010  ;;  %1030 = vpow2.f32 %v661_v41 }
 0x1d7   : > { %v1393_v24 = vpop.eup %1012  ;;  %1032 = vpow2.f32 %v663_v47 }
 0x1d8   : > { %v673_v16 = vadd.f32 %v1393_v24, %v1391_v11  ;;  %v1015_v36 = vpop.eup %1014  ;;  %1034 = vpow2.f32 %v665_v28 }
 0x1d9   : > { %v1017_v19 = vpop.eup %1016  ;;  %1036 = vpow2.f32 %v667_v27 }
 0x1da   : > { %v674_v39 = vadd.f32 %v1015_v36, %v673_v16  ;;  %v1019_v46 = vpop.eup %1018  ;;  %1038 = vpow2.f32 %v669_v1 }
 0x1db   : > { %v1021_v49 = vpop.eup %1020  ;;  %1040 = vpow2.f32 %v671_v6 }
 0x1dc   : > { %v675_v45 = vadd.f32 %v1017_v19, %v674_v39  ;;  %v1023_v53 = vpop.eup %1022 }
 0x1dd   : > { %v1025_v61 = vpop.eup %1024 }
 0x1de   : > { %v676_v48 = vadd.f32 %v1019_v46, %v675_v45  ;;  %v1027_v34 = vpop.eup %1026 }
 0x1df   : > { %v1029_v9 = vpop.eup %1028 }
 0x1e0   : > { %v677_v52 = vadd.f32 %v1021_v49, %v676_v48  ;;  %v1031_v2 = vpop.eup %1030 }
 0x1e1   : > { %v1033_v22 = vpop.eup %1032 }
 0x1e2   : > { %v678_v58 = vadd.f32 %v1023_v53, %v677_v52  ;;  %v1035_v44 = vpop.eup %1034 }
 0x1e3   : > { %v1037_v25 = vpop.eup %1036 }
 0x1e4   : > { %v679_v5 = vadd.f32 %v1025_v61, %v678_v58  ;;  %v1039_v30 = vpop.eup %1038 }
 0x1e5   : > { %v1041_v33 = vpop.eup %1040 }
 0x1e6   : > { %v680_v8 = vadd.f32 %v1027_v34, %v679_v5 }
 0x1e8   : > { %v681_v42 = vadd.f32 %v1029_v9, %v680_v8 }
 0x1ea   : > { %v682_v10 = vadd.f32 %v1031_v2, %v681_v42 }
 0x1ec   : > { %v683_v23 = vadd.f32 %v1033_v22, %v682_v10 }
 0x1ee   : > { %v684_v54 = vadd.f32 %v1035_v44, %v683_v23 }
 0x1f0   : > { %v685_v29 = vadd.f32 %v1037_v25, %v684_v54 }
 0x1f2   : > { %v686_v32 = vadd.f32 %v1039_v30, %v685_v29 }
 0x1f4   : > { %v687_v35 = vadd.f32 %v1041_v33, %v686_v32 }
 0x1f6   : > { %v688_v12 = vrot.slane %v687_v35, 4 }
 0x1f8   : > { %v689_v15 = vadd.f32 %v688_v12, %v687_v35 }
 0x1fa   : > { %v690_v18 = vrot.slane %v689_v15, 2 }
 0x1fc   : > { %v691_v14 = vadd.f32 %v690_v18, %v689_v15 }
 0x1fe   : > { %v692_v62 = vrot.slane %v691_v14, 1 }
 0x200   : > { %v693_v16 = vadd.f32 %v692_v62, %v691_v14 }
 0x202   : > { %1042 = vrcp.f32 %v693_v16 }
 0x20c   : > { %v1043_v17 = vpop.eup %1042 }
 0x20d   : > { %v695_v38 = vmul.f32 %v1043_v17, %v1391_v11  ;;  %v696_v39 = vmul.f32 %v1043_v17, %v1393_v24  ;;  %v697_v40 = vmul.f32 %v1043_v17, %v1015_v36  ;;  %v698_v41 = vmul.f32 %v1043_v17, %v1017_v19 }
 0x20e   : > { %v699_v45 = vmul.f32 %v1043_v17, %v1019_v46  ;;  %v700_v21 = vmul.f32 %v1043_v17, %v1021_v49  ;;  %v701_v47 = vmul.f32 %v1043_v17, %v1023_v53  ;;  %v702_v48 = vmul.f32 %v1043_v17, %v1025_v61 }
 0x20f   : > { %v703_v51 = vmul.f32 %v1043_v17, %v1027_v34  ;;  %v704_v28 = vmul.f32 %v1043_v17, %v1029_v9  ;;  %v705_v52 = vmul.f32 %v1043_v17, %v1031_v2  ;;  %v706_v57 = vmul.f32 %v1043_v17, %v1033_v22 }
 0x210   : > { %v707_v27 = vmul.f32 %v1043_v17, %v1035_v44  ;;  %v708_v58 = vmul.f32 %v1043_v17, %v1037_v25  ;;  %v709_v1 = vmul.f32 %v1043_v17, %v1039_v30  ;;  %v710_v5 = vmul.f32 %v1043_v17, %v1041_v33 }
 0x211   : > { %v711_v11 = vmul.f32 %v695_v38, %v1329_v55  ;;  %v712_v24 = vmul.f32 %v696_v39, %v1333_v59  ;;  %v713_v36 = vmul.f32 %v697_v40, %v1339_v63  ;;  %v714_v19 = vmul.f32 %v698_v41, %v1343_v3 }
 0x212   : > { %v715_v46 = vmul.f32 %v699_v45, %v1347_v7  ;;  %v716_v49 = vmul.f32 %v700_v21, %v1349_v13  ;;  %v717_v53 = vmul.f32 %v701_v47, %v1351_v20  ;;  %v718_v61 = vmul.f32 %v702_v48, %v1353_v26 }
 0x213   : > { %v719_v34 = vmul.f32 %v703_v51, %v1355_v31  ;;  %v720_v55 = vmul.f32 %v704_v28, %v1357_v37  ;;  %v721_v59 = vmul.f32 %v705_v52, %v1359_v43  ;;  %v722_v63 = vmul.f32 %v706_v57, %v1362_v50  ;;  %727 = vst [vmem:[%s1409_s22] sm:$0xff] %v711_v11 }
 0x214   : > { %728 = vst [vmem:[%s1409_s22 + $0x8] sm:$0xff] %v712_v24  ;;  %729 = vst [vmem:[%s1409_s22 + $0x10] sm:$0xff] %v713_v36  ;;  %v723_v3 = vmul.f32 %v707_v27, %v1331_v56  ;;  %v724_v7 = vmul.f32 %v708_v58, %v1335_v60  ;;  %v725_v13 = vmul.f32 %v709_v1, %v1341_v0 }
 0x215   : > { %730 = vst [vmem:[%s1409_s22 + $0x18] sm:$0xff] %v714_v19  ;;  %v726_v20 = vmul.f32 %v710_v5, %v1345_v4  ;;  %731 = vst [vmem:[%s1409_s22 + $0x20] sm:$0xff] %v715_v46 }
 0x216   : > { %732 = vst [vmem:[%s1409_s22 + $0x28] sm:$0xff] %v716_v49  ;;  %733 = vst [vmem:[%s1409_s22 + $0x30] sm:$0xff] %v717_v53 }
 0x217   : > { %734 = vst [vmem:[%s1409_s22 + $0x38] sm:$0xff] %v718_v61  ;;  %735 = vst [vmem:[%s1409_s22 + $0x40] sm:$0xff] %v719_v34 }
 0x218   : > { %736 = vst [vmem:[%s1409_s22 + $0x48] sm:$0xff] %v720_v55  ;;  %737 = vst [vmem:[%s1409_s22 + $0x50] sm:$0xff] %v721_v59 }
 0x219   : > { %738 = vst [vmem:[%s1409_s22 + $0x58] sm:$0xff] %v722_v63  ;;  %739 = vst [vmem:[%s1409_s22 + $0x60] sm:$0xff] %v723_v3 }
 0x21a   : > { %740 = vst [vmem:[%s1409_s22 + $0x68] sm:$0xff] %v724_v7  ;;  %741 = vst [vmem:[%s1409_s22 + $0x70] sm:$0xff] %v725_v13 }
 0x21b   : > { %742 = vst [vmem:[%s1409_s22 + $0x78] sm:$0xff] %v726_v20 }
 0x21c   : > { %1057 = shalt.err (!%p1054_p3)
}
 0x21d   : > { %s1058_s3 = scalar_lea.hbm %s1431_s25, 2048  ;;  %s1062_s6 = scalar_lea.hbm %s1496_s2, 8192 }
 0x21e   : > { %p1059_p4 = scmp.ne.s32.totalorder %s1431_s25, %s1058_s3  ;;  %p1063_p9 = scmp.lt.u32.totalorder %s1431_s25, %s1496_s2 }
 0x21f   : > { %p1064_p10 = scmp.lt.u32.totalorder %s1062_s6, %s1058_s3  ;;  %p1066_p12 = scmp.lt.u32.totalorder %s1058_s3, %s1431_s25 }
 0x220   : > { %p1060_p7 = pnand %p1059_p4, %p1165_p5 }
 0x221   : > { %p1065_p11 = por %p1064_p10, %p1063_p9 }
 0x222   : > { %p1061_p8 = pneg %p1060_p7 }
 0x223   : > { %p1067_p13 = por %p1066_p12, %p1065_p11 }
 0x225   : > { %p1068_p0 = pnand %p1067_p13, %p1061_p8 }
 0x227   : > { %1071 = shalt.err (!%p1068_p0)
}
 0x228   : > { %s1110_s14 = smov 128   ;;  %s1111_s16 = smov 8  }
 0x229   : > { %968 = dma.vmem_to_hbm [thread:$0]  (%p1165_p5), %s1433_s23, 2048, %s1431_s25, %s1453_s27, %s1110_s14, %s1110_s14, %s1111_s16  }
 0x22a PF: > { %p974_p1 = scmp.ge.s32.totalorder %s1106_s12, 2  ;;  %s772_s17 = sand.u32 1, %s1094_s9  }
 0x22b   : > { %s773_s21 = scalar_lea.sflag [#allocation3], %s772_s17 }
 0x22c   : > { %p971_p2 = pnand %p974_p1, %p1169_p6 }
 0x22e   : > { %1089 = dma.done.wait (!%p971_p2), %s773_s21, 2048  }
 0x22f   : > { %1091 = vsyncadd (!%p971_p2), %s773_s21, 4294965248  ;;  %p12_p3 = scmp.ge.s32.totalorder %s1152_s15, 6   ;;  %s1500_s9 = smov %s1098_s10 }
 0x230   : > { %s1501_s10 = smov %s1102_s11  ;;  %s1502_s11 = smov %s1163_s18 }
 0x231   : > { %s1503_s12 = smov %s1152_s15  ;;  %14 = sbr.rel (!%p12_p3) target bundleno = 3 (0x3), region = 63 }
 0x238   :  { %778 = vsyncpa [#allocation3], 1 }
 0x239   :  { %780 = vsyncpa [#allocation3 + $0x1], 1 }

</bundles_post_ra>
